<compile_context>
chip_gen: v6e
topology: v6e:2x2x1
jax: 0.10.0
libtpu: 0.0.40
codegen_flags: <defaults>
</compile_context>

<pallas_src>
import jax
import jax.numpy as jnp
from jax.experimental import pallas as pl
from jax.experimental.pallas import tpu as pltpu

HIDDEN = 512
PAD_OUT = 128          # fc3 out-dim (1) padded to a full lane width
NEG_SLOPE = 0.01       # F.leaky_relu default negative_slope


def _leaky_relu(v):
    return jnp.where(v > 0, v, NEG_SLOPE * v)


def _round_up(n, m):
    return ((n + m - 1) // m) * m


def mine_kernel(xy_ref, w1_ref, b1_ref, w2_ref, b2_ref, w3_ref, b3_ref, out_ref):
    # h1 = leaky_relu([x|y] @ [W1x;W1y] + (b1x+b1y))   -- fc1_x/fc1_y fused
    h1 = (jnp.dot(xy_ref[...], w1_ref[...], preferred_element_type=jnp.float32)
          + b1_ref[...])
    h1 = _leaky_relu(h1)

    # h2 = leaky_relu(h1 @ W2 + b2)   (bf16 into MXU, f32 accumulate/elementwise)
    h2 = (jnp.dot(h1.astype(jnp.bfloat16), w2_ref[...],
                  preferred_element_type=jnp.float32)
          + b2_ref[...])
    h2 = _leaky_relu(h2)

    # h3 = leaky_relu(h2 @ W3_pad + b3_pad)   (only column 0 is meaningful)
    h3 = (jnp.dot(h2.astype(jnp.bfloat16), w3_ref[...],
                  preferred_element_type=jnp.float32)
          + b3_ref[...])
    out_ref[...] = _leaky_relu(h3)


@jax.jit
def mine_forward(x, y, params):
    """x, y: (B, input_dim) float32. Returns (B, 1) float32."""
    w1, b1, w2, b2, w3, b3 = params
    B = x.shape[0]
    K2 = w1.shape[0]                      # 2 * input_dim

    # Batch tile: big enough to feed the MXU / amortize per-step overhead, but
    # weights (~0.7 MiB bf16) + double-buffered tiles stay far under the VMEM
    # budget on every generation (incl. v7x's 64 MiB physical / 32 MiB scoped).
    TB = 256 if B >= 256 else _round_up(max(B, 1), 8)
    B_pad = _round_up(B, TB)
    n_tiles = B_pad // TB

    # Fused fc1 input: [x | y], cast to bf16 (halves input DMA too).
    xy = jnp.concatenate([x, y], axis=1).astype(jnp.bfloat16)
    if B_pad != B:
        xy = jnp.pad(xy, ((0, B_pad - B), (0, 0)))

    out = pl.pallas_call(
        mine_kernel,
        out_shape=jax.ShapeDtypeStruct((B_pad, PAD_OUT), jnp.float32),
        grid=(n_tiles,),
        in_specs=[
            pl.BlockSpec((TB, K2), lambda i: (i, 0)),          # xy tile (pipelined)
            pl.BlockSpec((K2, HIDDEN), lambda i: (0, 0)),      # W1  (VMEM-resident)
            pl.BlockSpec((1, HIDDEN), lambda i: (0, 0)),       # b1
            pl.BlockSpec((HIDDEN, HIDDEN), lambda i: (0, 0)),  # W2
            pl.BlockSpec((1, HIDDEN), lambda i: (0, 0)),       # b2
            pl.BlockSpec((HIDDEN, PAD_OUT), lambda i: (0, 0)), # W3 (padded)
            pl.BlockSpec((1, PAD_OUT), lambda i: (0, 0)),      # b3 (padded)
        ],
        out_specs=pl.BlockSpec((TB, PAD_OUT), lambda i: (i, 0)),
        compiler_params=pltpu.CompilerParams(
            dimension_semantics=("parallel",),
        ),
    )(xy, w1, b1, w2, b2, w3, b3)

    return out[:B, :1]


def init_params(key, input_dim):
    """PyTorch-style uniform(-1/sqrt(fan_in), 1/sqrt(fan_in)) init, then
    pre-processed for the kernel:
      * W1 = [W1x ; W1y] stacked along the contraction dim, b1 = b1x + b1y
      * fc3 weight/bias zero-padded from out_dim=1 to out_dim=128
      * weights stored bf16 (MXU fast path / half the DMA), biases f32.
    """
    def linear(k, fan_in, fan_out):
        kw, kb = jax.random.split(k)
        bound = 1.0 / jnp.sqrt(jnp.float32(fan_in))
        w = jax.random.uniform(kw, (fan_in, fan_out), jnp.float32, -bound, bound)
        b = jax.random.uniform(kb, (1, fan_out), jnp.float32, -bound, bound)
        return w, b

    k1, k2, k3, k4 = jax.random.split(key, 4)
    w1x, b1x = linear(k1, input_dim, HIDDEN)
    w1y, b1y = linear(k2, input_dim, HIDDEN)
    w2, b2 = linear(k3, HIDDEN, HIDDEN)
    w3, b3 = linear(k4, HIDDEN, 1)

    w1 = jnp.concatenate([w1x, w1y], axis=0).astype(jnp.bfloat16)
    b1 = b1x + b1y
    w3_pad = (jnp.zeros((HIDDEN, PAD_OUT), jnp.float32)
              .at[:, :1].set(w3).astype(jnp.bfloat16))
    b3_pad = jnp.zeros((1, PAD_OUT), jnp.float32).at[:, :1].set(b3)
    return (w1, b1, w2.astype(jnp.bfloat16), b2, w3_pad, b3_pad)


def mine_reference(x, y, params):
    """Pure-JAX reference mirroring the kernel's bf16-weight / f32-accumulate math."""
    w1, b1, w2, b2, w3, b3 = params
    xy = jnp.concatenate([x, y], axis=1).astype(jnp.bfloat16)
    h1 = _leaky_relu(jnp.dot(xy, w1, preferred_element_type=jnp.float32) + b1)
    h2 = _leaky_relu(jnp.dot(h1.astype(jnp.bfloat16), w2,
                             preferred_element_type=jnp.float32) + b2)
    h3 = _leaky_relu(jnp.dot(h2.astype(jnp.bfloat16), w3,
                             preferred_element_type=jnp.float32) + b3)
    return h3[:, :1]


if __name__ == "__main__":
    B, INPUT_DIM = 8, 32

    key = jax.random.PRNGKey(0)
    kx, ky, kp = jax.random.split(key, 3)
    x = jax.random.normal(kx, (B, INPUT_DIM), jnp.float32)
    y = jax.random.normal(ky, (B, INPUT_DIM), jnp.float32)
    params = init_params(kp, INPUT_DIM)

    out = jax.block_until_ready(mine_forward(x, y, params))
    ref = mine_reference(x, y, params)

    assert out.shape == (B, 1), out.shape
    assert jnp.allclose(out, ref, atol=2e-3, rtol=2e-3), \
        float(jnp.max(jnp.abs(out - ref)))

    print("KERNEL_OK")
</pallas_src>

<mosaic_0001>
module attributes {stable_mosaic.version = 11 : i64} {
  func.func @mine_kernel(%arg0: i32, %arg1: memref<8x64xbf16, #tpu.memory_space<vmem>>, %arg2: memref<64x512xbf16, #tpu.memory_space<vmem>>, %arg3: memref<1x512xf32, #tpu.memory_space<vmem>>, %arg4: memref<512x512xbf16, #tpu.memory_space<vmem>>, %arg5: memref<1x512xf32, #tpu.memory_space<vmem>>, %arg6: memref<512x128xbf16, #tpu.memory_space<vmem>>, %arg7: memref<1x128xf32, #tpu.memory_space<vmem>>, %arg8: memref<8x128xf32, #tpu.memory_space<vmem>>) attributes {dimension_semantics = [#tpu.dimension_semantics<parallel>], iteration_bounds = array<i64: 1>, scalar_prefetch = 0 : i64, scratch_operands = 0 : i64, tpu.core_type = #tpu.core_type<tc>, window_params = [{transform_indices = @transform_0, window_bounds = array<i64: 8, 64>}, {pipeline_mode = #tpu.pipeline_mode<synchronous>, transform_indices = @transform_1, window_bounds = array<i64: 64, 512>}, {pipeline_mode = #tpu.pipeline_mode<synchronous>, transform_indices = @transform_2, window_bounds = array<i64: 1, 512>}, {pipeline_mode = #tpu.pipeline_mode<synchronous>, transform_indices = @transform_3, window_bounds = array<i64: 512, 512>}, {pipeline_mode = #tpu.pipeline_mode<synchronous>, transform_indices = @transform_4, window_bounds = array<i64: 1, 512>}, {pipeline_mode = #tpu.pipeline_mode<synchronous>, transform_indices = @transform_5, window_bounds = array<i64: 512, 128>}, {pipeline_mode = #tpu.pipeline_mode<synchronous>, transform_indices = @transform_6, window_bounds = array<i64: 1, 128>}, {transform_indices = @transform_7, window_bounds = array<i64: 8, 128>}]} {
    %c0 = arith.constant 0 : index
    %c0_0 = arith.constant 0 : index
    %0 = vector.load %arg1[%c0, %c0_0] : memref<8x64xbf16, #tpu.memory_space<vmem>>, vector<8x64xbf16>
    %c0_1 = arith.constant 0 : index
    %c0_2 = arith.constant 0 : index
    %1 = vector.load %arg2[%c0_1, %c0_2] : memref<64x512xbf16, #tpu.memory_space<vmem>>, vector<64x512xbf16>
    %cst = arith.constant dense<0.000000e+00> : vector<8x512xf32>
    %2 = tpu.matmul %0, %1, %cst {dimension_numbers = #tpu.dot_dimension_numbers<[1], [0], [0], [1], [0, 0, 1, 1], [], []>} : vector<8x64xbf16>, vector<64x512xbf16>, vector<8x512xf32> -> vector<8x512xf32>
    %c0_3 = arith.constant 0 : index
    %c0_4 = arith.constant 0 : index
    %3 = vector.load %arg3[%c0_3, %c0_4] : memref<1x512xf32, #tpu.memory_space<vmem>>, vector<1x512xf32>
    %4 = vector.broadcast %3 : vector<1x512xf32> to vector<8x512xf32>
    %5 = arith.addf %2, %4 : vector<8x512xf32>
    %cst_5 = arith.constant 0.000000e+00 : f32
    %6 = vector.broadcast %cst_5 : f32 to vector<8x512xf32>
    %7 = arith.cmpf ogt, %5, %6 : vector<8x512xf32>
    %cst_6 = arith.constant 0.00999999977 : f32
    %8 = vector.broadcast %cst_6 : f32 to vector<8x512xf32>
    %9 = arith.mulf %8, %5 : vector<8x512xf32>
    %10 = arith.select %7, %5, %9 : vector<8x512xi1>, vector<8x512xf32>
    %11 = arith.truncf %10 : vector<8x512xf32> to vector<8x512xbf16>
    %c0_7 = arith.constant 0 : index
    %c0_8 = arith.constant 0 : index
    %12 = vector.load %arg4[%c0_7, %c0_8] : memref<512x512xbf16, #tpu.memory_space<vmem>>, vector<512x512xbf16>
    %cst_9 = arith.constant dense<0.000000e+00> : vector<8x512xf32>
    %13 = tpu.matmul %11, %12, %cst_9 {dimension_numbers = #tpu.dot_dimension_numbers<[1], [0], [0], [1], [0, 0, 1, 1], [], []>} : vector<8x512xbf16>, vector<512x512xbf16>, vector<8x512xf32> -> vector<8x512xf32>
    %c0_10 = arith.constant 0 : index
    %c0_11 = arith.constant 0 : index
    %14 = vector.load %arg5[%c0_10, %c0_11] : memref<1x512xf32, #tpu.memory_space<vmem>>, vector<1x512xf32>
    %15 = vector.broadcast %14 : vector<1x512xf32> to vector<8x512xf32>
    %16 = arith.addf %13, %15 : vector<8x512xf32>
    %cst_12 = arith.constant 0.000000e+00 : f32
    %17 = vector.broadcast %cst_12 : f32 to vector<8x512xf32>
    %18 = arith.cmpf ogt, %16, %17 : vector<8x512xf32>
    %cst_13 = arith.constant 0.00999999977 : f32
    %19 = vector.broadcast %cst_13 : f32 to vector<8x512xf32>
    %20 = arith.mulf %19, %16 : vector<8x512xf32>
    %21 = arith.select %18, %16, %20 : vector<8x512xi1>, vector<8x512xf32>
    %22 = arith.truncf %21 : vector<8x512xf32> to vector<8x512xbf16>
    %c0_14 = arith.constant 0 : index
    %c0_15 = arith.constant 0 : index
    %23 = vector.load %arg6[%c0_14, %c0_15] : memref<512x128xbf16, #tpu.memory_space<vmem>>, vector<512x128xbf16>
    %cst_16 = arith.constant dense<0.000000e+00> : vector<8x128xf32>
    %24 = tpu.matmul %22, %23, %cst_16 {dimension_numbers = #tpu.dot_dimension_numbers<[1], [0], [0], [1], [0, 0, 1, 1], [], []>} : vector<8x512xbf16>, vector<512x128xbf16>, vector<8x128xf32> -> vector<8x128xf32>
    %c0_17 = arith.constant 0 : index
    %c0_18 = arith.constant 0 : index
    %25 = vector.load %arg7[%c0_17, %c0_18] : memref<1x128xf32, #tpu.memory_space<vmem>>, vector<1x128xf32>
    %26 = vector.broadcast %25 : vector<1x128xf32> to vector<8x128xf32>
    %27 = arith.addf %24, %26 : vector<8x128xf32>
    %cst_19 = arith.constant 0.000000e+00 : f32
    %28 = vector.broadcast %cst_19 : f32 to vector<8x128xf32>
    %29 = arith.cmpf ogt, %27, %28 : vector<8x128xf32>
    %cst_20 = arith.constant 0.00999999977 : f32
    %30 = vector.broadcast %cst_20 : f32 to vector<8x128xf32>
    %31 = arith.mulf %30, %27 : vector<8x128xf32>
    %32 = arith.select %29, %27, %31 : vector<8x128xi1>, vector<8x128xf32>
    %c0_21 = arith.constant 0 : index
    %c0_22 = arith.constant 0 : index
    %33 = vector.load %arg8[%c0_21, %c0_22] : memref<8x128xf32, #tpu.memory_space<vmem>>, vector<8x128xf32>
    tpu.vector_store %arg8[%c0_21, %c0_22], %32 {strides = array<i32>} : memref<8x128xf32, #tpu.memory_space<vmem>>, vector<8x128xf32>,
    return
  }
  func.func @transform_0(%arg0: i32) -> (i32, i32) {
    %c0_i32 = arith.constant 0 : i32
    %c0_i32_0 = arith.constant 0 : i32
    return %arg0, %c0_i32 : i32, i32
  }
  func.func @transform_1(%arg0: i32) -> (i32, i32) {
    %c0_i32 = arith.constant 0 : i32
    %c0_i32_0 = arith.constant 0 : i32
    %c0_i32_1 = arith.constant 0 : i32
    return %c0_i32, %c0_i32_0 : i32, i32
  }
  func.func @transform_2(%arg0: i32) -> (i32, i32) {
    %c0_i32 = arith.constant 0 : i32
    %c0_i32_0 = arith.constant 0 : i32
    %c0_i32_1 = arith.constant 0 : i32
    return %c0_i32, %c0_i32_0 : i32, i32
  }
  func.func @transform_3(%arg0: i32) -> (i32, i32) {
    %c0_i32 = arith.constant 0 : i32
    %c0_i32_0 = arith.constant 0 : i32
    %c0_i32_1 = arith.constant 0 : i32
    return %c0_i32, %c0_i32_0 : i32, i32
  }
  func.func @transform_4(%arg0: i32) -> (i32, i32) {
    %c0_i32 = arith.constant 0 : i32
    %c0_i32_0 = arith.constant 0 : i32
    %c0_i32_1 = arith.constant 0 : i32
    return %c0_i32, %c0_i32_0 : i32, i32
  }
  func.func @transform_5(%arg0: i32) -> (i32, i32) {
    %c0_i32 = arith.constant 0 : i32
    %c0_i32_0 = arith.constant 0 : i32
    %c0_i32_1 = arith.constant 0 : i32
    return %c0_i32, %c0_i32_0 : i32, i32
  }
  func.func @transform_6(%arg0: i32) -> (i32, i32) {
    %c0_i32 = arith.constant 0 : i32
    %c0_i32_0 = arith.constant 0 : i32
    %c0_i32_1 = arith.constant 0 : i32
    return %c0_i32, %c0_i32_0 : i32, i32
  }
  func.func @transform_7(%arg0: i32) -> (i32, i32) {
    %c0_i32 = arith.constant 0 : i32
    %c0_i32_0 = arith.constant 0 : i32
    return %arg0, %c0_i32 : i32, i32
  }
}

</mosaic_0001>

<bundles_post_ra>
// kernel: mine_forward.1
= control target key start
LH: loop header
LB: loop body
LE: loop exit
PB: predicated region body
PF: predicated region fallthrough
CT: control target
= control target key end

     0   :  { %12 = vsyncpa [#allocation3], 0  ;;  %s2257_s0 = inlined_call_operand.vmem [shape: bf16[8,64], index: 0, kind: input, shape index: {}]   ;;  %s2258_s1 = inlined_call_operand.hbm [shape: bf16[64,512], index: 1, kind: input, shape index: {}]   ;;  %s2259_s2 = inlined_call_operand.vmem [shape: f32[1,512], index: 2, kind: input, shape index: {}]   ;;  %s2260_s3 = inlined_call_operand.hbm [shape: bf16[512,512], index: 3, kind: input, shape index: {}]   ;;  %s2261_s4 = inlined_call_operand.vmem [shape: f32[1,512], index: 4, kind: input, shape index: {}]   ;;  %s2262_s5 = inlined_call_operand.hbm [shape: bf16[512,128], index: 5, kind: input, shape index: {}]   ;;  %s2263_s6 = inlined_call_operand.vmem [shape: f32[1,128], index: 6, kind: input, shape index: {}]   ;;  %s2264_s7 = inlined_call_operand.vmem [shape: f32[8,128], index: 7, kind: output, shape index: {}]  }
   0x1   :  { %13 = vsyncpa [#allocation5], 0  ;;  %s2155_s24 = smov [#allocation4]   ;;  %s2156_s26 = smov [#allocation2]  }
   0x2   :  { %s35_s25 = sshll.u32 %s2155_s24, 4  ;;  %s21_s27 = sshll.u32 %s2156_s26, 4  ;;  %s36_s25 = int_to_ptr.vmem [resolvable:$true] %s35_s25  ;;  %s22_s27 = int_to_ptr.vmem [resolvable:$true] %s21_s27 }
   0x3   :  { %s2099_s28 = scalar_lea.vmem %s36_s25, 16384  ;;  %p2104_p1 = scmp.lt.s32.totalorder %s36_s25, %s36_s25 }
   0x4   :  { %p2100_p0 = scmp.ne.s32.totalorder %s36_s25, %s2099_s28  ;;  %p2105_p2 = scmp.lt.s32.totalorder %s2099_s28, %s2099_s28 }
   0x6   :  { %p2106_p3 = por %p2105_p2, %p2104_p1 }
   0x8   :  { %p2107_p4 = pnand %p2106_p3, %p2100_p0 }
   0xa   :  { %2110 = shalt.err (!%p2107_p4)
}
   0xb   :  { %s2157_s29 = smov 256   ;;  %s2158_s30 = smov 16  }
   0xc   :  { %41 = dma.hbm_to_vmem [thread:$0]  %s2260_s3, 16384, %s36_s25, [#allocation5], %s2157_s29, %s2157_s29, %s2158_s30  }
   0xd   :  { %s2119_s10 = scalar_lea.vmem %s22_s27, 2048  ;;  %p2124_p6 = scmp.lt.s32.totalorder %s22_s27, %s22_s27 }
   0xe   :  { %p2120_p5 = scmp.ne.s32.totalorder %s22_s27, %s2119_s10  ;;  %p2125_p7 = scmp.lt.s32.totalorder %s2119_s10, %s2119_s10 }
  0x10   :  { %p2126_p8 = por %p2125_p7, %p2124_p6 }
  0x12   :  { %p2127_p9 = pnand %p2126_p8, %p2120_p5 }
  0x14   :  { %2130 = shalt.err (!%p2127_p9)
}
  0x15   :  { %27 = dma.hbm_to_vmem [thread:$0]  %s2258_s1, 2048, %s22_s27, [#allocation3], %s2157_s29, %s2157_s29, %s2158_s30  }
  0x16   :  { %s2159_s13 = smov [#allocation6]  }
  0x17   :  { %s49_s14 = sshll.u32 %s2159_s13, 4  ;;  %s50_s14 = int_to_ptr.vmem [resolvable:$true] %s49_s14 }
  0x18   :  { %s2139_s15 = scalar_lea.vmem %s50_s14, 4096  ;;  %p2144_p11 = scmp.lt.s32.totalorder %s50_s14, %s50_s14 }
  0x19   :  { %p2140_p10 = scmp.ne.s32.totalorder %s50_s14, %s2139_s15  ;;  %p2145_p12 = scmp.lt.s32.totalorder %s2139_s15, %s2139_s15 }
  0x1b   :  { %p2146_p13 = por %p2145_p12, %p2144_p11 }
  0x1d   :  { %p2147_p0 = pnand %p2146_p13, %p2140_p10 }
  0x1f   :  { %2150 = shalt.err (!%p2147_p0)
}
  0x20   :  { %s2160_s3 = smov 64   ;;  %s2161_s16 = smov 4  }
  0x21   :  { %55 = dma.hbm_to_vmem [thread:$0]  %s2262_s5, 4096, %s50_s14, [#allocation5], %s2160_s3, %s2160_s3, %s2161_s16  }
  0x22   :  { %2151 = dma.done.wait [#allocation3], 2048  }
  0x23   :  { %2152 = vsyncadd [#allocation3], 4294965248 }
  0x24   :  { %2153 = dma.done.wait [#allocation5], 20480  }
  0x25   :  { %2154 = vsyncadd [#allocation5], 4294946816  ;;  %v2162_v0 = vmov 0   ;;  %v1843_v1 = vld [vmem:[#allocation2 + $0x64] ss:$16 sps:$4 sm:$0xff]   ;;  %vm187_vm0 = vcmask 523264  }
  0x26   :  { %223 = vmatprep.mubr.bf16.mxu0 %v2162_v0  ;;  %264 = vmatprep.mubr.bf16.mxu1 %v2162_v0  ;;  %v1845_v2 = vld [vmem:[#allocation2 + $0x6c] ss:$16 sps:$4 sm:$0xff]   ;;  %v1847_v3 = vld [vmem:[#allocation2 + $0x60] ss:$16 sps:$4 sm:$0xff]   ;;  %v1848_v4 = vld [vmem:[#allocation2 + $0x68] ss:$16 sps:$4 sm:$0xff]  }
  0x27   :  { %199 = vmatprep.subr.bf16.mxu0 %v1843_v1  ;;  %240 = vmatprep.subr.bf16.mxu1 %v1845_v2  ;;  %v1849_v5 = vld [vmem:[#allocation2 + $0x44] ss:$16 sps:$4 sm:$0xff]   ;;  %v1851_v6 = vld [vmem:[#allocation2 + $0x4c] ss:$16 sps:$4 sm:$0xff]   ;;  %v1853_v7 = vld [vmem:[#allocation2 + $0x40] ss:$16 sps:$4 sm:$0xff]  }
  0x28   :  { %200 = vmatpush1.bf16.msra.mxu0 %v1847_v3  ;;  %241 = vmatpush1.bf16.msra.mxu1 %v1848_v4  ;;  %v1854_v8 = vld [vmem:[#allocation2 + $0x48] ss:$16 sps:$4 sm:$0xff]   ;;  %v1855_v9 = vld [vmem:[#allocation2 + $0x24] ss:$16 sps:$4 sm:$0xff]   ;;  %v1857_v10 = vld [vmem:[#allocation2 + $0x2c] ss:$16 sps:$4 sm:$0xff]  }
  0x29   :  { %201 = vmatprep.subr.bf16.mxu0 %v1849_v5  ;;  %242 = vmatprep.subr.bf16.mxu1 %v1851_v6  ;;  %v1859_v11 = vld [vmem:[#allocation2 + $0x20] ss:$16 sps:$4 sm:$0xff]   ;;  %v1860_v12 = vld [vmem:[#allocation2 + $0x28] ss:$16 sps:$4 sm:$0xff]   ;;  %v1861_v13 = vld [vmem:[#allocation2 + $0x4] ss:$16 sps:$4 sm:$0xff]  }
  0x2a   :  { %v1863_v14 = vld [vmem:[#allocation2 + $0xc] ss:$16 sps:$4 sm:$0xff]   ;;  %v1865_v15 = vld [vmem:[#allocation2] ss:$16 sps:$4 sm:$0xff]   ;;  %v1866_v16 = vld [vmem:[#allocation2 + $0x8] ss:$16 sps:$4 sm:$0xff]  }
  0x2b   :  { %v1869_v17 = vld [vmem:[#allocation4 + $0xe4] ss:$16 sps:$4 sm:$0xff]   ;;  %v68_v19 = vld [vmem:[%s2257_s0] sm:$0xf] }
  0x2c   :  { %202 = vmatpush1.bf16.msra.mxu0 %v1853_v7  ;;  %243 = vmatpush1.bf16.msra.mxu1 %v1854_v8  ;;  %v1872_v18 = vld [vmem:[#allocation4 + $0x2e4] ss:$16 sps:$4 sm:$0xff]   ;;  %v1867_v20 = vld [vmem:[#allocation4 + $0xe0] ss:$16 sps:$4 sm:$0xff]  }
  0x2d   :  { %203 = vmatprep.subr.bf16.mxu0 %v1855_v9  ;;  %244 = vmatprep.subr.bf16.mxu1 %v1857_v10  ;;  %v1870_v21 = vld [vmem:[#allocation4 + $0x2e0] ss:$16 sps:$4 sm:$0xff]   ;;  %v1875_v22 = vld [vmem:[#allocation4 + $0xc4] ss:$16 sps:$4 sm:$0xff]  }
  0x2e   :  { %v1878_v23 = vld [vmem:[#allocation4 + $0x2c4] ss:$16 sps:$4 sm:$0xff]   ;;  %v1873_v24 = vld [vmem:[#allocation4 + $0xc0] ss:$16 sps:$4 sm:$0xff]  }
  0x2f   :  { %v1876_v25 = vld [vmem:[#allocation4 + $0x2c0] ss:$16 sps:$4 sm:$0xff]   ;;  %v1881_v26 = vld [vmem:[#allocation4 + $0xa4] ss:$16 sps:$4 sm:$0xff]  }
  0x30   :  { %204 = vmatpush1.bf16.msra.mxu0 %v1859_v11  ;;  %245 = vmatpush1.bf16.msra.mxu1 %v1860_v12  ;;  %v1884_v27 = vld [vmem:[#allocation4 + $0x2a4] ss:$16 sps:$4 sm:$0xff]   ;;  %v1879_v28 = vld [vmem:[#allocation4 + $0xa0] ss:$16 sps:$4 sm:$0xff]  }
  0x31   :  { %205 = vmatprep.subr.bf16.mxu0 %v1861_v13  ;;  %246 = vmatprep.subr.bf16.mxu1 %v1863_v14  ;;  %v1882_v29 = vld [vmem:[#allocation4 + $0x2a0] ss:$16 sps:$4 sm:$0xff]   ;;  %v1887_v30 = vld [vmem:[#allocation4 + $0x84] ss:$16 sps:$4 sm:$0xff]  }
  0x32   :  { %v1890_v31 = vld [vmem:[#allocation4 + $0x284] ss:$16 sps:$4 sm:$0xff]   ;;  %v1885_v32 = vld [vmem:[#allocation4 + $0x80] ss:$16 sps:$4 sm:$0xff]  }
  0x33   :  { %v1888_v33 = vld [vmem:[#allocation4 + $0x280] ss:$16 sps:$4 sm:$0xff]   ;;  %v1893_v34 = vld [vmem:[#allocation4 + $0x64] ss:$16 sps:$4 sm:$0xff]  }
  0x34   :  { %206 = vmatpush1.bf16.msra.mxu0 %v1865_v15  ;;  %247 = vmatpush1.bf16.msra.mxu1 %v1866_v16  ;;  %v1896_v35 = vld [vmem:[#allocation4 + $0x264] ss:$16 sps:$4 sm:$0xff]   ;;  %v1891_v36 = vld [vmem:[#allocation4 + $0x60] ss:$16 sps:$4 sm:$0xff]  }
  0x35   :  { %1079 = vmatprep.subr.bf16.mxu0 %v1869_v17  ;;  %1120 = vmatprep.subr.bf16.mxu1 %v1872_v18  ;;  %v1894_v37 = vld [vmem:[#allocation4 + $0x260] ss:$16 sps:$4 sm:$0xff]   ;;  %v1899_v38 = vld [vmem:[#allocation4 + $0x44] ss:$16 sps:$4 sm:$0xff]   ;;  %v1965_v18 = vld [vmem:[#allocation4 + $0xec] ss:$16 sps:$4 sm:$0xff]  }
  0x36   :  { %v1902_v39 = vld [vmem:[#allocation4 + $0x244] ss:$16 sps:$4 sm:$0xff]   ;;  %v1897_v40 = vld [vmem:[#allocation4 + $0x40] ss:$16 sps:$4 sm:$0xff]  }
  0x37   :  { %1628 = vmatmul.mubr.msk.bf16.vlgmr.msra.gmra.mxu0 %vm187_vm0, %v68_v19  ;;  %1629 = vmatmul.mubr.msk.bf16.vlgmr.msra.gmra.mxu1 %vm187_vm0, %v68_v19  ;;  %v1900_v41 = vld [vmem:[#allocation4 + $0x240] ss:$16 sps:$4 sm:$0xff]   ;;  %v1905_v42 = vld [vmem:[#allocation4 + $0x24] ss:$16 sps:$4 sm:$0xff]   ;;  %v1968_v19 = vld [vmem:[#allocation4 + $0x2ec] ss:$16 sps:$4 sm:$0xff]  }
  0x38   :  { %1080 = vmatpush1.bf16.msra.mxu0 %v1867_v20  ;;  %1121 = vmatpush1.bf16.msra.mxu1 %v1870_v21  ;;  %v1908_v43 = vld [vmem:[#allocation4 + $0x224] ss:$16 sps:$4 sm:$0xff]   ;;  %v1903_v44 = vld [vmem:[#allocation4 + $0x20] ss:$16 sps:$4 sm:$0xff]   ;;  %v87_v20 = vlaneseq }
  0x39   :  { %1081 = vmatprep.subr.bf16.mxu0 %v1875_v22  ;;  %1122 = vmatprep.subr.bf16.mxu1 %v1878_v23  ;;  %v1906_v45 = vld [vmem:[#allocation4 + $0x220] ss:$16 sps:$4 sm:$0xff]   ;;  %v1911_v46 = vld [vmem:[#allocation4 + $0x4] ss:$16 sps:$4 sm:$0xff]  }
  0x3a   :  { %v1914_v47 = vld [vmem:[#allocation4 + $0x204] ss:$16 sps:$4 sm:$0xff]   ;;  %v1909_v48 = vld [vmem:[#allocation4] ss:$16 sps:$4 sm:$0xff]   ;;  %v2215_v21 = vshrl.u32 %v87_v20, 7 }
  0x3b   :  { %v1912_v49 = vld [vmem:[#allocation4 + $0x200] ss:$16 sps:$4 sm:$0xff]   ;;  %v1917_v50 = vld [vmem:[#allocation4 + $0x1e4] ss:$16 sps:$4 sm:$0xff]   ;;  %v2008_v20 = vld [vmem:[#allocation4 + $0x208] ss:$16 sps:$4 sm:$0xff]  }
  0x3c   :  { %1082 = vmatpush1.bf16.msra.mxu0 %v1873_v24  ;;  %1123 = vmatpush1.bf16.msra.mxu1 %v1876_v25  ;;  %v1920_v51 = vld [vmem:[#allocation4 + $0x3e4] ss:$16 sps:$4 sm:$0xff]   ;;  %v1915_v52 = vld [vmem:[#allocation4 + $0x1e0] ss:$16 sps:$4 sm:$0xff]   ;;  %v89_v22 = vsub.s32 0, %v2215_v21  ;;  %v97_v23 = vsub.s32 2, %v2215_v21 }
  0x3d   :  { %1083 = vmatprep.subr.bf16.mxu0 %v1881_v26  ;;  %1124 = vmatprep.subr.bf16.mxu1 %v1884_v27  ;;  %v1918_v53 = vld [vmem:[#allocation4 + $0x3e0] ss:$16 sps:$4 sm:$0xff]   ;;  %v1923_v54 = vld [vmem:[#allocation4 + $0x1c4] ss:$16 sps:$4 sm:$0xff]   ;;  %v93_v25 = vsub.s32 1, %v2215_v21  ;;  %v101_v26 = vsub.s32 3, %v2215_v21 }
  0x3e   :  { %v1926_v55 = vld [vmem:[#allocation4 + $0x3c4] ss:$16 sps:$4 sm:$0xff]   ;;  %v1921_v56 = vld [vmem:[#allocation4 + $0x1c0] ss:$16 sps:$4 sm:$0xff]  }
  0x3f   :  { %v1924_v57 = vld [vmem:[#allocation4 + $0x3c0] ss:$16 sps:$4 sm:$0xff]   ;;  %v1929_v58 = vld [vmem:[#allocation4 + $0x1a4] ss:$16 sps:$4 sm:$0xff]  }
  0x40   :  { %1084 = vmatpush1.bf16.msra.mxu0 %v1879_v28  ;;  %1125 = vmatpush1.bf16.msra.mxu1 %v1882_v29  ;;  %v1932_v59 = vld [vmem:[#allocation4 + $0x3a4] ss:$16 sps:$4 sm:$0xff]   ;;  %v1927_v60 = vld [vmem:[#allocation4 + $0x1a0] ss:$16 sps:$4 sm:$0xff]  }
  0x41   :  { %1085 = vmatprep.subr.bf16.mxu0 %v1887_v30  ;;  %1126 = vmatprep.subr.bf16.mxu1 %v1890_v31  ;;  %v1930_v61 = vld [vmem:[#allocation4 + $0x3a0] ss:$16 sps:$4 sm:$0xff]   ;;  %v1935_v62 = vld [vmem:[#allocation4 + $0x184] ss:$16 sps:$4 sm:$0xff]  }
  0x42   :  { %v1938_v63 = vld [vmem:[#allocation4 + $0x384] ss:$16 sps:$4 sm:$0xff]   ;;  %v1933_v0 = vld [vmem:[#allocation4 + $0x180] ss:$16 sps:$4 sm:$0xff]  }
  0x43   :  { %v1936_v1 = vld [vmem:[#allocation4 + $0x380] ss:$16 sps:$4 sm:$0xff]   ;;  %v1941_v2 = vld [vmem:[#allocation4 + $0x164] ss:$16 sps:$4 sm:$0xff]  }
  0x44   :  { %1086 = vmatpush1.bf16.msra.mxu0 %v1885_v32  ;;  %1127 = vmatpush1.bf16.msra.mxu1 %v1888_v33  ;;  %v1944_v3 = vld [vmem:[#allocation4 + $0x364] ss:$16 sps:$4 sm:$0xff]   ;;  %v1939_v4 = vld [vmem:[#allocation4 + $0x160] ss:$16 sps:$4 sm:$0xff]  }
  0x45   :  { %1087 = vmatprep.subr.bf16.mxu0 %v1893_v34  ;;  %1128 = vmatprep.subr.bf16.mxu1 %v1896_v35  ;;  %v1942_v5 = vld [vmem:[#allocation4 + $0x360] ss:$16 sps:$4 sm:$0xff]   ;;  %v1947_v6 = vld [vmem:[#allocation4 + $0x144] ss:$16 sps:$4 sm:$0xff]  }
  0x46   :  { %v1950_v7 = vld [vmem:[#allocation4 + $0x344] ss:$16 sps:$4 sm:$0xff]   ;;  %v1945_v8 = vld [vmem:[#allocation4 + $0x140] ss:$16 sps:$4 sm:$0xff]  }
  0x47   :  { %v1948_v9 = vld [vmem:[#allocation4 + $0x340] ss:$16 sps:$4 sm:$0xff]   ;;  %v1953_v10 = vld [vmem:[#allocation4 + $0x124] ss:$16 sps:$4 sm:$0xff]  }
  0x48   :  { %1088 = vmatpush1.bf16.msra.mxu0 %v1891_v36  ;;  %1129 = vmatpush1.bf16.msra.mxu1 %v1894_v37  ;;  %v1956_v11 = vld [vmem:[#allocation4 + $0x324] ss:$16 sps:$4 sm:$0xff]   ;;  %v1951_v12 = vld [vmem:[#allocation4 + $0x120] ss:$16 sps:$4 sm:$0xff]  }
  0x49   :  { %1089 = vmatprep.subr.bf16.mxu0 %v1899_v38  ;;  %1130 = vmatprep.subr.bf16.mxu1 %v1902_v39  ;;  %v1954_v13 = vld [vmem:[#allocation4 + $0x320] ss:$16 sps:$4 sm:$0xff]   ;;  %v1959_v14 = vld [vmem:[#allocation4 + $0x104] ss:$16 sps:$4 sm:$0xff]  }
  0x4a   :  { %v1962_v15 = vld [vmem:[#allocation4 + $0x304] ss:$16 sps:$4 sm:$0xff]   ;;  %v1957_v16 = vld [vmem:[#allocation4 + $0x100] ss:$16 sps:$4 sm:$0xff]  }
  0x4b   :  { %v1960_v17 = vld [vmem:[#allocation4 + $0x300] ss:$16 sps:$4 sm:$0xff]  }
  0x4c   :  { %1090 = vmatpush1.bf16.msra.mxu0 %v1897_v40  ;;  %1131 = vmatpush1.bf16.msra.mxu1 %v1900_v41  ;;  %v85_v24 = vld [vmem:[%s2259_s2] sm:$0xf] }
  0x4d   :  { %1091 = vmatprep.subr.bf16.mxu0 %v1905_v42  ;;  %1132 = vmatprep.subr.bf16.mxu1 %v1908_v43  ;;  %v90_v27 = vrot.slane %v85_v24, %v89_v22  ;;  %v98_v28 = vrot.slane %v85_v24, %v97_v23  ;;  %v94_v31 = vrot.slane %v85_v24, %v93_v25 }
  0x4e   :  { %v102_v32 = vrot.slane %v85_v24, %v101_v26  ;;  %v2013_v24 = vld [vmem:[#allocation4 + $0x1ec] ss:$16 sps:$4 sm:$0xff]  }
  0x50   :  { %1092 = vmatpush1.bf16.msra.mxu0 %v1903_v44  ;;  %1133 = vmatpush1.bf16.msra.mxu1 %v1906_v45 }
  0x51   :  { %1093 = vmatprep.subr.bf16.mxu0 %v1911_v46  ;;  %1134 = vmatprep.subr.bf16.mxu1 %v1914_v47 }
  0x54   :  { %1094 = vmatpush1.bf16.msra.mxu0 %v1909_v48  ;;  %1135 = vmatpush1.bf16.msra.mxu1 %v1912_v49 }
  0x55   :  { %1095 = vmatprep.subr.bf16.mxu0 %v1917_v50  ;;  %1136 = vmatprep.subr.bf16.mxu1 %v1920_v51 }
  0x58   :  { %1096 = vmatpush2.bf16.msra.mxu0 %v1915_v52  ;;  %1137 = vmatpush2.bf16.msra.mxu1 %v1918_v53  ;;  %v1963_v52 = vld [vmem:[#allocation4 + $0xe8] ss:$16 sps:$4 sm:$0xff]  }
  0x59   :  { %1097 = vmatprep.subr.bf16.mxu0 %v1923_v54  ;;  %1138 = vmatprep.subr.bf16.mxu1 %v1926_v55  ;;  %v1966_v55 = vld [vmem:[#allocation4 + $0x2e8] ss:$16 sps:$4 sm:$0xff]  }
  0x5c   :  { %1098 = vmatpush2.bf16.msra.mxu0 %v1921_v56  ;;  %1139 = vmatpush2.bf16.msra.mxu1 %v1924_v57  ;;  %v1971_v57 = vld [vmem:[#allocation4 + $0xcc] ss:$16 sps:$4 sm:$0xff]  }
  0x5d   :  { %1099 = vmatprep.subr.bf16.mxu0 %v1929_v58  ;;  %1140 = vmatprep.subr.bf16.mxu1 %v1932_v59  ;;  %v1974_v58 = vld [vmem:[#allocation4 + $0x2cc] ss:$16 sps:$4 sm:$0xff]   ;;  %v1969_v59 = vld [vmem:[#allocation4 + $0xc8] ss:$16 sps:$4 sm:$0xff]  }
  0x60   :  { %1100 = vmatpush2.bf16.msra.mxu0 %v1927_v60  ;;  %1141 = vmatpush2.bf16.msra.mxu1 %v1930_v61  ;;  %v1972_v60 = vld [vmem:[#allocation4 + $0x2c8] ss:$16 sps:$4 sm:$0xff]   ;;  %v1977_v61 = vld [vmem:[#allocation4 + $0xac] ss:$16 sps:$4 sm:$0xff]  }
  0x61   :  { %1101 = vmatprep.subr.bf16.mxu0 %v1935_v62  ;;  %1142 = vmatprep.subr.bf16.mxu1 %v1938_v63  ;;  %v1980_v62 = vld [vmem:[#allocation4 + $0x2ac] ss:$16 sps:$4 sm:$0xff]   ;;  %v1975_v63 = vld [vmem:[#allocation4 + $0xa8] ss:$16 sps:$4 sm:$0xff]  }
  0x64   :  { %1102 = vmatpush2.bf16.msra.mxu0 %v1933_v0  ;;  %1143 = vmatpush2.bf16.msra.mxu1 %v1936_v1  ;;  %v1978_v0 = vld [vmem:[#allocation4 + $0x2a8] ss:$16 sps:$4 sm:$0xff]   ;;  %v1983_v1 = vld [vmem:[#allocation4 + $0x8c] ss:$16 sps:$4 sm:$0xff]  }
  0x65   :  { %1103 = vmatprep.subr.bf16.mxu0 %v1941_v2  ;;  %1144 = vmatprep.subr.bf16.mxu1 %v1944_v3  ;;  %v1986_v2 = vld [vmem:[#allocation4 + $0x28c] ss:$16 sps:$4 sm:$0xff]   ;;  %v1981_v3 = vld [vmem:[#allocation4 + $0x88] ss:$16 sps:$4 sm:$0xff]  }
  0x68   :  { %1104 = vmatpush2.bf16.msra.mxu0 %v1939_v4  ;;  %1145 = vmatpush2.bf16.msra.mxu1 %v1942_v5  ;;  %v1984_v4 = vld [vmem:[#allocation4 + $0x288] ss:$16 sps:$4 sm:$0xff]   ;;  %v1989_v5 = vld [vmem:[#allocation4 + $0x6c] ss:$16 sps:$4 sm:$0xff]  }
  0x69   :  { %1105 = vmatprep.subr.bf16.mxu0 %v1947_v6  ;;  %1146 = vmatprep.subr.bf16.mxu1 %v1950_v7  ;;  %v1992_v6 = vld [vmem:[#allocation4 + $0x26c] ss:$16 sps:$4 sm:$0xff]   ;;  %v1987_v7 = vld [vmem:[#allocation4 + $0x68] ss:$16 sps:$4 sm:$0xff]  }
  0x6c   :  { %1106 = vmatpush2.bf16.msra.mxu0 %v1945_v8  ;;  %1147 = vmatpush2.bf16.msra.mxu1 %v1948_v9  ;;  %v1990_v8 = vld [vmem:[#allocation4 + $0x268] ss:$16 sps:$4 sm:$0xff]   ;;  %v1995_v9 = vld [vmem:[#allocation4 + $0x4c] ss:$16 sps:$4 sm:$0xff]  }
  0x6d   :  { %1107 = vmatprep.subr.bf16.mxu0 %v1953_v10  ;;  %1148 = vmatprep.subr.bf16.mxu1 %v1956_v11  ;;  %v1998_v10 = vld [vmem:[#allocation4 + $0x24c] ss:$16 sps:$4 sm:$0xff]   ;;  %v1993_v11 = vld [vmem:[#allocation4 + $0x48] ss:$16 sps:$4 sm:$0xff]  }
  0x70   :  { %1108 = vmatpush2.bf16.msra.mxu0 %v1951_v12  ;;  %1149 = vmatpush2.bf16.msra.mxu1 %v1954_v13  ;;  %v1996_v12 = vld [vmem:[#allocation4 + $0x248] ss:$16 sps:$4 sm:$0xff]   ;;  %v2001_v13 = vld [vmem:[#allocation4 + $0x2c] ss:$16 sps:$4 sm:$0xff]  }
  0x71   :  { %1109 = vmatprep.subr.bf16.mxu0 %v1959_v14  ;;  %1150 = vmatprep.subr.bf16.mxu1 %v1962_v15  ;;  %v2004_v14 = vld [vmem:[#allocation4 + $0x22c] ss:$16 sps:$4 sm:$0xff]   ;;  %v1999_v15 = vld [vmem:[#allocation4 + $0x28] ss:$16 sps:$4 sm:$0xff]  }
  0x74   :  { %1110 = vmatpush2.bf16.msra.mxu0 %v1957_v16  ;;  %1151 = vmatpush2.bf16.msra.mxu1 %v1960_v17  ;;  %v2002_v16 = vld [vmem:[#allocation4 + $0x228] ss:$16 sps:$4 sm:$0xff]   ;;  %v2007_v17 = vld [vmem:[#allocation4 + $0xc] ss:$16 sps:$4 sm:$0xff]  }
  0x75   :  { %1161 = vmatprep.subr.bf16.mxu0 %v1965_v18  ;;  %1202 = vmatprep.subr.bf16.mxu1 %v1968_v19  ;;  %v2010_v18 = vld [vmem:[#allocation4 + $0x20c] ss:$16 sps:$4 sm:$0xff]   ;;  %v2005_v19 = vld [vmem:[#allocation4 + $0x8] ss:$16 sps:$4 sm:$0xff]  }
  0xf7   :  { %v225_v29 = vpop.f32.mrf.mxu0  ;;  %v266_v30 = vpop.f32.mrf.mxu1 }
  0xf8   :  { %v226_v33 = vadd.f32 %v225_v29, %v90_v27  ;;  %v267_v34 = vadd.f32 %v266_v30, %v98_v28  ;;  %v2016_v27 = vld [vmem:[#allocation4 + $0x3ec] ss:$16 sps:$4 sm:$0xff]   ;;  %v2011_v28 = vld [vmem:[#allocation4 + $0x1e8] ss:$16 sps:$4 sm:$0xff]  }
  0xf9   :  { %v227_v35 = vpop.f32.mrf.mxu0  ;;  %v268_v36 = vpop.f32.mrf.mxu1  ;;  %v2014_v29 = vld [vmem:[#allocation4 + $0x3e8] ss:$16 sps:$4 sm:$0xff]   ;;  %v2019_v30 = vld [vmem:[#allocation4 + $0x1cc] ss:$16 sps:$4 sm:$0xff]  }
  0xfa   :  { %v277_v37 = vmul.f32 0.01, %v226_v33  ;;  %vm273_vm1 = vcmp.gt.f32.partialorder %v226_v33, 0.0  ;;  %v279_v38 = vmul.f32 0.01, %v267_v34  ;;  %v228_v39 = vadd.f32 %v227_v35, %v94_v31 }
  0xfb   :  { %v269_v40 = vadd.f32 %v268_v36, %v102_v32  ;;  %v229_v41 = vpop.f32.mrf.mxu0  ;;  %v270_v42 = vpop.f32.mrf.mxu1  ;;  %vm275_vm2 = vcmp.gt.f32.partialorder %v267_v34, 0.0  ;;  %v2022_v31 = vld [vmem:[#allocation4 + $0x3cc] ss:$16 sps:$4 sm:$0xff]   ;;  %v2017_v32 = vld [vmem:[#allocation4 + $0x1c8] ss:$16 sps:$4 sm:$0xff]  }
  0xfc   :  { %vm274_vm3 = vcmp.gt.f32.partialorder %v228_v39, 0.0  ;;  %v278_v43 = vmul.f32 0.01, %v228_v39  ;;  %v281_v46 = vsel %vm273_vm1, %v226_v33, %v277_v37  ;;  %v283_v48 = vsel %vm275_vm2, %v267_v34, %v279_v38  ;;  %v2020_v33 = vld [vmem:[#allocation4 + $0x3c8] ss:$16 sps:$4 sm:$0xff]  }
  0xfd   :  { %v230_v44 = vpop.f32.mrf.mxu0  ;;  %v271_v45 = vpop.f32.mrf.mxu1  ;;  %vm276_vm4 = vcmp.gt.f32.partialorder %v269_v40, 0.0  ;;  %v280_v47 = vmul.f32 0.01, %v269_v40  ;;  %v2232_v53 = vpack.c.bf16 %v281_v46, %v281_v46  ;;  %v2234_v56 = vpack.c.bf16 %v283_v48, %v283_v48  ;;  %v2025_v34 = vld [vmem:[#allocation4 + $0x1ac] ss:$16 sps:$4 sm:$0xff]  }
  0xfe   :  { %v282_v49 = vsel %vm274_vm3, %v228_v39, %v278_v43  ;;  %v2028_v35 = vld [vmem:[#allocation4 + $0x3ac] ss:$16 sps:$4 sm:$0xff]   ;;  %v2023_v36 = vld [vmem:[#allocation4 + $0x1a8] ss:$16 sps:$4 sm:$0xff]  }
  0xff   :  { %v286_v50 = vpack.c.bf16 %v282_v49, %v282_v49  ;;  %v284_v51 = vsel %vm276_vm4, %v269_v40, %v280_v47  ;;  %v2026_v37 = vld [vmem:[#allocation4 + $0x3a8] ss:$16 sps:$4 sm:$0xff]   ;;  %v2031_v38 = vld [vmem:[#allocation4 + $0x18c] ss:$16 sps:$4 sm:$0xff]  }
 0x100   :  { %v288_v54 = vpack.c.bf16 %v284_v51, %v284_v51  ;;  %v2034_v39 = vld [vmem:[#allocation4 + $0x38c] ss:$16 sps:$4 sm:$0xff]   ;;  %v2029_v40 = vld [vmem:[#allocation4 + $0x188] ss:$16 sps:$4 sm:$0xff]  }
 0x101   :  { %1111 = vmatprep.mubr.bf16.mxu0 %v286_v50  ;;  %v2032_v41 = vld [vmem:[#allocation4 + $0x388] ss:$16 sps:$4 sm:$0xff]   ;;  %v2037_v42 = vld [vmem:[#allocation4 + $0x16c] ss:$16 sps:$4 sm:$0xff]  }
 0x102   :  { %1152 = vmatprep.mubr.bf16.mxu1 %v288_v54  ;;  %1112 = vmatmul.mubr.bf16.vlgmr.msra.gmra.mxu0 %v2232_v53  ;;  %v2040_v43 = vld [vmem:[#allocation4 + $0x36c] ss:$16 sps:$4 sm:$0xff]   ;;  %v2035_v44 = vld [vmem:[#allocation4 + $0x168] ss:$16 sps:$4 sm:$0xff]  }
 0x103   :  { %1153 = vmatmul.mubr.bf16.vlgmr.msra.gmra.mxu1 %v2234_v56  ;;  %1162 = vmatpush1.bf16.msra.mxu0 %v1963_v52  ;;  %v2038_v45 = vld [vmem:[#allocation4 + $0x368] ss:$16 sps:$4 sm:$0xff]   ;;  %v2043_v46 = vld [vmem:[#allocation4 + $0x14c] ss:$16 sps:$4 sm:$0xff]  }
 0x104   :  { %1203 = vmatpush1.bf16.msra.mxu1 %v1966_v55  ;;  %1193 = vmatprep.mubr.bf16.mxu0 %v286_v50  ;;  %v2046_v47 = vld [vmem:[#allocation4 + $0x34c] ss:$16 sps:$4 sm:$0xff]   ;;  %v2041_v48 = vld [vmem:[#allocation4 + $0x148] ss:$16 sps:$4 sm:$0xff]  }
 0x105   :  { %1234 = vmatprep.mubr.bf16.mxu1 %v288_v54  ;;  %1163 = vmatprep.subr.bf16.mxu0 %v1971_v57  ;;  %v2044_v49 = vld [vmem:[#allocation4 + $0x348] ss:$16 sps:$4 sm:$0xff]   ;;  %v2049_v50 = vld [vmem:[#allocation4 + $0x12c] ss:$16 sps:$4 sm:$0xff]  }
 0x106   :  { %1204 = vmatprep.subr.bf16.mxu1 %v1974_v58  ;;  %v2052_v51 = vld [vmem:[#allocation4 + $0x32c] ss:$16 sps:$4 sm:$0xff]   ;;  %v2047_v52 = vld [vmem:[#allocation4 + $0x128] ss:$16 sps:$4 sm:$0xff]  }
 0x107   :  { %1164 = vmatpush1.bf16.msra.mxu0 %v1969_v59  ;;  %v2050_v54 = vld [vmem:[#allocation4 + $0x328] ss:$16 sps:$4 sm:$0xff]   ;;  %v2055_v55 = vld [vmem:[#allocation4 + $0x10c] ss:$16 sps:$4 sm:$0xff]  }
 0x108   :  { %1205 = vmatpush1.bf16.msra.mxu1 %v1972_v60  ;;  %1165 = vmatprep.subr.bf16.mxu0 %v1977_v61  ;;  %v2058_v57 = vld [vmem:[#allocation4 + $0x30c] ss:$16 sps:$4 sm:$0xff]   ;;  %v2053_v58 = vld [vmem:[#allocation4 + $0x108] ss:$16 sps:$4 sm:$0xff]  }
 0x109   :  { %1206 = vmatprep.subr.bf16.mxu1 %v1980_v62  ;;  %v2056_v59 = vld [vmem:[#allocation4 + $0x308] ss:$16 sps:$4 sm:$0xff]   ;;  %v2061_v62 = vld [vmem:[#allocation6 + $0x70] sm:$0xff]  }
 0x10a   :  { %v2059_v60 = vld [vmem:[#allocation6 + $0x78] sm:$0xff]  }
 0x10b   :  { %1166 = vmatpush1.bf16.msra.mxu0 %v1975_v63  ;;  %v2060_v61 = vld [vmem:[#allocation6 + $0x38] sm:$0xff]   ;;  %v2062_v63 = vld [vmem:[#allocation6 + $0x30] sm:$0xff]  }
 0x10c   :  { %1207 = vmatpush1.bf16.msra.mxu1 %v1978_v0  ;;  %1167 = vmatprep.subr.bf16.mxu0 %v1983_v1  ;;  %v2063_v0 = vld [vmem:[#allocation6 + $0x68] sm:$0xff]  }
 0x10d   :  { %1208 = vmatprep.subr.bf16.mxu1 %v1986_v2  ;;  %v2064_v1 = vld [vmem:[#allocation6 + $0x28] sm:$0xff]   ;;  %v2065_v2 = vld [vmem:[#allocation6 + $0x60] sm:$0xff]  }
 0x10f   :  { %1168 = vmatpush1.bf16.msra.mxu0 %v1981_v3  ;;  %v2066_v3 = vld [vmem:[#allocation6 + $0x20] sm:$0xff]  }
 0x110   :  { %1209 = vmatpush1.bf16.msra.mxu1 %v1984_v4  ;;  %1169 = vmatprep.subr.bf16.mxu0 %v1989_v5  ;;  %v2067_v4 = vld [vmem:[#allocation6 + $0x58] sm:$0xff]  }
 0x111   :  { %1210 = vmatprep.subr.bf16.mxu1 %v1992_v6  ;;  %v2068_v5 = vld [vmem:[#allocation6 + $0x18] sm:$0xff]  }
 0x112   :  { %v2075_v6 = vld [vmem:[#allocation6 + $0xf8] sm:$0xff]  }
 0x113   :  { %1170 = vmatpush1.bf16.msra.mxu0 %v1987_v7  ;;  %v2076_v7 = vld [vmem:[#allocation6 + $0xb8] sm:$0xff]  }
 0x114   :  { %1211 = vmatpush1.bf16.msra.mxu1 %v1990_v8  ;;  %1171 = vmatprep.subr.bf16.mxu0 %v1995_v9  ;;  %v2077_v8 = vld [vmem:[#allocation6 + $0xf0] sm:$0xff]  }
 0x115   :  { %1212 = vmatprep.subr.bf16.mxu1 %v1998_v10  ;;  %v2070_v9 = vld [vmem:[#allocation6 + $0x10] sm:$0xff]   ;;  %v2079_v10 = vld [vmem:[#allocation6 + $0xe8] sm:$0xff]  }
 0x117   :  { %1172 = vmatpush1.bf16.msra.mxu0 %v1993_v11  ;;  %v2071_v11 = vld [vmem:[#allocation6 + $0x48] sm:$0xff]  }
 0x118   :  { %1213 = vmatpush1.bf16.msra.mxu1 %v1996_v12  ;;  %1173 = vmatprep.subr.bf16.mxu0 %v2001_v13  ;;  %v2080_v12 = vld [vmem:[#allocation6 + $0xa8] sm:$0xff]  }
 0x119   :  { %1214 = vmatprep.subr.bf16.mxu1 %v2004_v14  ;;  %v2072_v13 = vld [vmem:[#allocation6 + $0x8] sm:$0xff]   ;;  %v2081_v14 = vld [vmem:[#allocation6 + $0xe0] sm:$0xff]  }
 0x11b   :  { %1174 = vmatpush1.bf16.msra.mxu0 %v1999_v15  ;;  %v2073_v15 = vld [vmem:[#allocation6 + $0x40] sm:$0xff]  }
 0x11c   :  { %1215 = vmatpush1.bf16.msra.mxu1 %v2002_v16  ;;  %1175 = vmatprep.subr.bf16.mxu0 %v2007_v17  ;;  %v2082_v16 = vld [vmem:[#allocation6 + $0xa0] sm:$0xff]  }
 0x11d   :  { %1216 = vmatprep.subr.bf16.mxu1 %v2010_v18  ;;  %v2074_v17 = vld [vmem:[#allocation6] sm:$0xff]   ;;  %v2083_v18 = vld [vmem:[#allocation6 + $0xd8] sm:$0xff]  }
 0x11f   :  { %1176 = vmatpush1.bf16.msra.mxu0 %v2005_v19  ;;  %v2084_v19 = vld [vmem:[#allocation6 + $0x98] sm:$0xff]  }
 0x120   :  { %1217 = vmatpush1.bf16.msra.mxu1 %v2008_v20  ;;  %1177 = vmatprep.subr.bf16.mxu0 %v2013_v24  ;;  %v2085_v20 = vld [vmem:[#allocation6 + $0xd0] sm:$0xff]  }
 0x121   :  { %1218 = vmatprep.subr.bf16.mxu1 %v2016_v27  ;;  %v2086_v24 = vld [vmem:[#allocation6 + $0x90] sm:$0xff]   ;;  %v2087_v27 = vld [vmem:[#allocation6 + $0xc8] sm:$0xff]  }
 0x123   :  { %1178 = vmatpush2.bf16.msra.mxu0 %v2011_v28  ;;  %v2088_v28 = vld [vmem:[#allocation6 + $0x88] sm:$0xff]  }
 0x124   :  { %1219 = vmatpush2.bf16.msra.mxu1 %v2014_v29  ;;  %1179 = vmatprep.subr.bf16.mxu0 %v2019_v30  ;;  %v2089_v29 = vld [vmem:[#allocation6 + $0xc0] sm:$0xff]  }
 0x125   :  { %1220 = vmatprep.subr.bf16.mxu1 %v2022_v31  ;;  %v2090_v30 = vld [vmem:[#allocation6 + $0x80] sm:$0xff]  }
 0x126   :  { %v417_v31 = vld [vmem:[%s2261_s4] sm:$0xf] }
 0x127   :  { %1180 = vmatpush2.bf16.msra.mxu0 %v2017_v32  ;;  %v422_v32 = vrot.slane %v417_v31, %v89_v22 }
 0x128   :  { %1221 = vmatpush2.bf16.msra.mxu1 %v2020_v33  ;;  %1181 = vmatprep.subr.bf16.mxu0 %v2025_v34  ;;  %v426_v33 = vrot.slane %v417_v31, %v93_v25 }
 0x129   :  { %1222 = vmatprep.subr.bf16.mxu1 %v2028_v35 }
 0x12b   :  { %1182 = vmatpush2.bf16.msra.mxu0 %v2023_v36 }
 0x12c   :  { %1223 = vmatpush2.bf16.msra.mxu1 %v2026_v37  ;;  %1183 = vmatprep.subr.bf16.mxu0 %v2031_v38 }
 0x12d   :  { %1224 = vmatprep.subr.bf16.mxu1 %v2034_v39 }
 0x12f   :  { %1184 = vmatpush2.bf16.msra.mxu0 %v2029_v40 }
 0x130   :  { %1225 = vmatpush2.bf16.msra.mxu1 %v2032_v41  ;;  %1185 = vmatprep.subr.bf16.mxu0 %v2037_v42 }
 0x131   :  { %1226 = vmatprep.subr.bf16.mxu1 %v2040_v43 }
 0x133   :  { %1186 = vmatpush2.bf16.msra.mxu0 %v2035_v44 }
 0x134   :  { %1227 = vmatpush2.bf16.msra.mxu1 %v2038_v45  ;;  %1187 = vmatprep.subr.bf16.mxu0 %v2043_v46 }
 0x135   :  { %1228 = vmatprep.subr.bf16.mxu1 %v2046_v47 }
 0x137   :  { %1188 = vmatpush2.bf16.msra.mxu0 %v2041_v48 }
 0x138   :  { %1229 = vmatpush2.bf16.msra.mxu1 %v2044_v49  ;;  %1189 = vmatprep.subr.bf16.mxu0 %v2049_v50  ;;  %v430_v50 = vrot.slane %v417_v31, %v97_v23 }
 0x139   :  { %1230 = vmatprep.subr.bf16.mxu1 %v2052_v51  ;;  %v434_v51 = vrot.slane %v417_v31, %v101_v26 }
 0x13b   :  { %1190 = vmatpush2.bf16.msra.mxu0 %v2047_v52 }
 0x13c   :  { %1231 = vmatpush2.bf16.msra.mxu1 %v2050_v54  ;;  %1191 = vmatprep.subr.bf16.mxu0 %v2055_v55 }
 0x13d   :  { %1232 = vmatprep.subr.bf16.mxu1 %v2058_v57 }
 0x13f   :  { %1192 = vmatpush2.bf16.msra.mxu0 %v2053_v58 }
 0x140   :  { %1233 = vmatpush2.bf16.msra.mxu1 %v2056_v59  ;;  %1791 = vmatprep.subr.bf16.mxu0 %v2059_v60 }
 0x141   :  { %1813 = vmatprep.subr.bf16.mxu1 %v2075_v6 }
 0x142   :  { %1194 = vmatmul.mubr.bf16.vlgmr.msra.gmra.mxu0 %v2232_v53  ;;  %v2069_v53 = vld [vmem:[#allocation6 + $0x50] sm:$0xff]  }
 0x143   :  { %1235 = vmatmul.mubr.bf16.vlgmr.msra.gmra.mxu1 %v2234_v56  ;;  %1792 = vmatpush3.bf16.msra.mxu0 %v2060_v61  ;;  %v2078_v56 = vld [vmem:[#allocation6 + $0xb0] sm:$0xff]  }
 0x144   :  { %1793 = vmatprep.subr.bf16.mxu0 %v2061_v62  ;;  %1814 = vmatpush3.bf16.msra.mxu1 %v2076_v7 }
 0x145   :  { %1815 = vmatprep.subr.bf16.mxu1 %v2077_v8 }
 0x147   :  { %1794 = vmatpush3.bf16.msra.mxu0 %v2062_v63 }
 0x148   :  { %1795 = vmatprep.subr.bf16.mxu0 %v2063_v0  ;;  %1816 = vmatpush3.bf16.msra.mxu1 %v2078_v56  ;;  %v1758_v56 = vld [vmem:[%s2263_s6] ss:$0 sm:$0xff] }
 0x149   :  { %1817 = vmatprep.subr.bf16.mxu1 %v2079_v10 }
 0x14b   :  { %1796 = vmatpush3.bf16.msra.mxu0 %v2064_v1 }
 0x14c   :  { %1797 = vmatprep.subr.bf16.mxu0 %v2065_v2  ;;  %1818 = vmatpush3.bf16.msra.mxu1 %v2080_v12 }
 0x14d   :  { %1819 = vmatprep.subr.bf16.mxu1 %v2081_v14 }
 0x14f   :  { %1798 = vmatpush3.bf16.msra.mxu0 %v2066_v3 }
 0x150   :  { %1799 = vmatprep.subr.bf16.mxu0 %v2067_v4  ;;  %1820 = vmatpush3.bf16.msra.mxu1 %v2082_v16 }
 0x151   :  { %1821 = vmatprep.subr.bf16.mxu1 %v2083_v18 }
 0x153   :  { %1800 = vmatpush3.bf16.msra.mxu0 %v2068_v5 }
 0x154   :  { %1801 = vmatprep.subr.bf16.mxu0 %v2069_v53  ;;  %1822 = vmatpush3.bf16.msra.mxu1 %v2084_v19 }
 0x155   :  { %1823 = vmatprep.subr.bf16.mxu1 %v2085_v20 }
 0x157   :  { %1802 = vmatpush3.bf16.msra.mxu0 %v2070_v9 }
 0x158   :  { %1803 = vmatprep.subr.bf16.mxu0 %v2071_v11  ;;  %1824 = vmatpush3.bf16.msra.mxu1 %v2086_v24 }
 0x159   :  { %1825 = vmatprep.subr.bf16.mxu1 %v2087_v27 }
 0x15b   :  { %1804 = vmatpush3.bf16.msra.mxu0 %v2072_v13 }
 0x15c   :  { %1805 = vmatprep.subr.bf16.mxu0 %v2073_v15  ;;  %1826 = vmatpush3.bf16.msra.mxu1 %v2088_v28 }
 0x15d   :  { %1827 = vmatprep.subr.bf16.mxu1 %v2089_v29 }
 0x15f   :  { %1806 = vmatpush3.bf16.msra.mxu0 %v2074_v17 }
 0x160   :  { %1828 = vmatpush3.bf16.msra.mxu1 %v2090_v30 }
 0x1c2   :  { %v1113_v34 = vpop.f32.mrf.mxu0 }
 0x1c3   :  { %v1114_v35 = vadd.f32 %v1113_v34, %v422_v32  ;;  %v1154_v36 = vpop.f32.mrf.mxu1 }
 0x1c4   :  { %v1115_v37 = vpop.f32.mrf.mxu0 }
 0x1c5   :  { %v1155_v38 = vadd.f32 %v1154_v36, %v1114_v35  ;;  %v1116_v39 = vadd.f32 %v1115_v37, %v426_v33  ;;  %v1156_v40 = vpop.f32.mrf.mxu1 }
 0x1c6   :  { %v1117_v41 = vpop.f32.mrf.mxu0 }
 0x1c7   :  { %vm1243_vm5 = vcmp.gt.f32.partialorder %v1155_v38, 0.0  ;;  %v1247_v42 = vmul.f32 0.01, %v1155_v38  ;;  %v1157_v43 = vadd.f32 %v1156_v40, %v1116_v39  ;;  %v1158_v44 = vpop.f32.mrf.mxu1 }
 0x1c8   :  { %v1118_v45 = vpop.f32.mrf.mxu0 }
 0x1c9   :  { %vm1244_vm6 = vcmp.gt.f32.partialorder %v1157_v43, 0.0  ;;  %v1248_v46 = vmul.f32 0.01, %v1157_v43  ;;  %v1159_v47 = vpop.f32.mrf.mxu1  ;;  %v1251_v22 = vsel %vm1243_vm5, %v1155_v38, %v1247_v42 }
 0x1ca   :  { %v1255_v25 = vpack.c.bf16 %v1251_v22, %v1251_v22 }
 0x1cb   :  { %v1252_v48 = vsel %vm1244_vm6, %v1157_v43, %v1248_v46 }
 0x1cc   :  { %v1256_v49 = vpack.c.bf16 %v1252_v48, %v1252_v48 }
 0x1ce   :  { %1554 = vmatprep.mubr.bf16.mxu0 %v1256_v49 }
 0x1cf   :  { %1555 = vmatmul.mubr.bf16.vlgmr.msra.gmra.mxu0 %v1255_v25 }
 0x202   :  { %v1195_v52 = vpop.f32.mrf.mxu0 }
 0x203   :  { %v1196_v54 = vadd.f32 %v1195_v52, %v430_v50  ;;  %v1236_v55 = vpop.f32.mrf.mxu1 }
 0x204   :  { %v1197_v57 = vpop.f32.mrf.mxu0 }
 0x205   :  { %v1237_v58 = vadd.f32 %v1236_v55, %v1196_v54  ;;  %v1198_v59 = vadd.f32 %v1197_v57, %v434_v51  ;;  %v1238_v60 = vpop.f32.mrf.mxu1 }
 0x206   :  { %v1199_v61 = vpop.f32.mrf.mxu0 }
 0x207   :  { %vm1245_vm7 = vcmp.gt.f32.partialorder %v1237_v58, 0.0  ;;  %v1249_v62 = vmul.f32 0.01, %v1237_v58  ;;  %v1239_v63 = vadd.f32 %v1238_v60, %v1198_v59  ;;  %v1240_v0 = vpop.f32.mrf.mxu1 }
 0x208   :  { %v1200_v1 = vpop.f32.mrf.mxu0 }
 0x209   :  { %vm1246_vm8 = vcmp.gt.f32.partialorder %v1239_v63, 0.0  ;;  %v1250_v2 = vmul.f32 0.01, %v1239_v63  ;;  %v1241_v3 = vpop.f32.mrf.mxu1  ;;  %v1253_v23 = vsel %vm1245_vm7, %v1237_v58, %v1249_v62 }
 0x20a   :  { %v1257_v26 = vpack.c.bf16 %v1253_v23, %v1253_v23 }
 0x20b   :  { %v1254_v4 = vsel %vm1246_vm8, %v1239_v63, %v1250_v2 }
 0x20c   :  { %v1258_v21 = vpack.c.bf16 %v1254_v4, %v1254_v4 }
 0x20e   :  { %1594 = vmatprep.mubr.bf16.mxu1 %v1258_v21 }
 0x20f   :  { %1595 = vmatmul.mubr.bf16.vlgmr.msra.gmra.mxu1 %v1257_v26 }
 0x28f   :  { %v1807_v5 = vpop.f32.mrf.mxu0 }
 0x291   :  { %v1808_v6 = vpop.f32.mrf.mxu0 }
 0x292   :  { %v1809_v53 = vadd.f32 %v1808_v6, %v1807_v5 }
 0x293   :  { %v1810_v7 = vpop.f32.mrf.mxu0 }
 0x294   :  { %v1557_v11 = vadd.f32 %v1809_v53, %v1758_v56 }
 0x295   :  { %v1811_v8 = vpop.f32.mrf.mxu0 }
 0x2cf   :  { %v1829_v9 = vpop.f32.mrf.mxu1 }
 0x2d1   :  { %v1830_v10 = vpop.f32.mrf.mxu1 }
 0x2d2   :  { %v1831_v12 = vadd.f32 %v1830_v10, %v1829_v9 }
 0x2d3   :  { %v1832_v13 = vpop.f32.mrf.mxu1 }
 0x2d4   :  { %v1597_v14 = vadd.f32 %v1831_v12, %v1557_v11 }
 0x2d5   :  { %v1833_v15 = vpop.f32.mrf.mxu1 }
 0x2d6   :  { %vm1602_vm9 = vcmp.gt.f32.partialorder %v1597_v14, 0.0  ;;  %v1603_v16 = vmul.f32 0.01, %v1597_v14 }
 0x2d8   :  { %v1604_v17 = vsel %vm1602_vm9, %v1597_v14, %v1603_v16 }
 0x2d9   :  { %1605 = vst [vmem:[%s2264_s7] sm:$0xff] %v1604_v17 }
 0x2da   :  { %1610 = vsyncpa [#allocation3], 1 }
 0x2db   :  { %1611 = vsyncpa [#allocation5], 1 }

</bundles_post_ra>
